<compile_context>
chip_gen: v7x
topology: tpu7x:2x2x1
jax: 0.10.0
libtpu: 0.0.40
codegen_flags: <defaults>
</compile_context>

<pallas_src>
import functools

import jax
import jax.numpy as jnp
from jax.experimental import pallas as pl
from jax.experimental.pallas import tpu as pltpu


def _centre_loss_kernel(labels_ref, x_ref, centers_ref, dist_ref, *, num_classes):
    """One grid step processes `block_b` batch rows.

    labels_ref : (block_b, 1) int32 labels tile (auto-pipelined VMEM)
    x_ref      : (block_b, D) feature tile (auto-pipelined VMEM)
    centers_ref: (C, D) centers table, VMEM-resident (constant index map)
    dist_ref   : (block_b, 1) f32 output: clamped squared distance per row
    """
    lbl = labels_ref[...]                                    # (block_b, 1) int32
    block_b = lbl.shape[0]

    # One-hot select of each sample's center row via the MXU (exact: one-hot).
    class_ids = jax.lax.broadcasted_iota(jnp.int32, (block_b, num_classes), 1)
    ctab = centers_ref[...]                                  # (C, D)
    onehot = (lbl == class_ids).astype(ctab.dtype)           # (block_b, C)
    c_sel = jnp.dot(onehot, ctab, preferred_element_type=jnp.float32)  # (block_b, D) f32

    # d_i = ||x_i - c_{l_i}||^2 in f32 (upcast for bf16 inputs / v5e VPU).
    x = x_ref[...].astype(jnp.float32)                       # (block_b, D)
    diff = x - c_sel
    d = jnp.sum(diff * diff, axis=1, keepdims=True)          # (block_b, 1)

    # Same clamp as the torch forward.
    dist_ref[...] = jnp.clip(d, 1e-12, 1e12)


def centre_loss(x, centers, labels, *, block_b=None,
                vmem_budget_bytes=48 * 1024 * 1024):
    """x: (B, D), centers: (C, D), labels: (B,) int -> scalar f32 loss."""
    B, D = x.shape
    C, D2 = centers.shape
    assert D == D2

    x_itemsize = jnp.dtype(x.dtype).itemsize
    centers_bytes = C * D * jnp.dtype(centers.dtype).itemsize

    if centers_bytes + (16 << 20) > vmem_budget_bytes:
        # TODO(synk): for class tables too large to keep VMEM-resident, add a
        # chunked-centers grid axis (or a coalesced HBM row-gather) fallback.
        raise NotImplementedError(
            f"centers table ({centers_bytes} bytes) too large for the "
            f"resident-VMEM path (budget {vmem_budget_bytes} bytes)")

    if block_b is None:
        # Minimum rows per block by dtype packing (bf16 packs 2 rows / sublane).
        if x_itemsize >= 4:
            min_rows = 8
        elif x_itemsize == 2:
            min_rows = 16
        else:
            min_rows = 32
        block_b = B  # full-array block is always a legal fallback
        for cand in (1024, 512, 256, 128, 64, 32, 16, 8):
            if cand < min_rows or B % cand != 0:
                continue
            need = (centers_bytes                     # resident centers table
                    + 2 * cand * D * x_itemsize       # double-buffered x tiles
                    + 2 * cand * 4                    # labels tiles
                    + 2 * cand * 4                    # output tiles
                    + cand * (C + 3 * D) * 4)         # onehot / c_sel / diff temps
            if need <= vmem_budget_bytes:
                block_b = cand
                break
    assert B % block_b == 0, (B, block_b)

    labels2d = labels.reshape(B, 1).astype(jnp.int32)
    kernel = functools.partial(_centre_loss_kernel, num_classes=C)

    dist = pl.pallas_call(
        kernel,
        out_shape=jax.ShapeDtypeStruct((B, 1), jnp.float32),
        grid_spec=pltpu.PrefetchScalarGridSpec(
            num_scalar_prefetch=0,
            grid=(B // block_b,),
            in_specs=[
                pl.BlockSpec((block_b, 1), lambda i: (i, 0)),   # labels
                pl.BlockSpec((block_b, D), lambda i: (i, 0)),   # x
                pl.BlockSpec((C, D), lambda i: (0, 0)),         # centers (resident)
            ],
            out_specs=pl.BlockSpec((block_b, 1), lambda i: (i, 0)),
        ),
        compiler_params=pltpu.CompilerParams(
            # No carry across grid steps -> megacore can shard the batch axis.
            dimension_semantics=("parallel",),
            vmem_limit_bytes=vmem_budget_bytes,
        ),
    )(labels2d, x, centers)

    # Final mean in plain JAX (kept outside the kernel: no carried accumulator,
    # which is what allows the "parallel" grid axis above).
    return jnp.mean(dist)


def centre_loss_ref(x, centers, labels):
    """Pure-JAX reference mirroring the PyTorch forward."""
    C = centers.shape[0]
    distmat = (jnp.sum(x**2, axis=1, keepdims=True)
               + jnp.sum(centers**2, axis=1, keepdims=True).T
               - 2.0 * x @ centers.T)
    mask = labels[:, None] == jnp.arange(C)[None, :]
    sel = jnp.sum(jnp.where(mask, distmat, 0.0), axis=1)
    sel = jnp.clip(sel, 1e-12, 1e12)
    return jnp.mean(sel)


if __name__ == "__main__":
    key = jax.random.PRNGKey(0)
    k1, k2, k3 = jax.random.split(key, 3)

    batch = 64
    num_classes = 32
    feat_dim = 128   # lane-dense feature dim (multiple of 128)

    # torch.randn-equivalent parameter init: standard normal centers.
    centers = jax.random.normal(k1, (num_classes, feat_dim), dtype=jnp.float32)
    x = jax.random.normal(k2, (batch, feat_dim), dtype=jnp.float32)
    labels = jax.random.randint(k3, (batch,), 0, num_classes, dtype=jnp.int32)

    # block_b=16 -> grid=(4,) exercises the pipelined x/labels tiles and the
    # resident centers block across multiple grid steps.
    loss = centre_loss(x, centers, labels, block_b=16)
    jax.block_until_ready(loss)

    ref = centre_loss_ref(x, centers, labels)
    assert jnp.allclose(loss, ref, rtol=1e-4, atol=1e-4), (loss, ref)

    print("KERNEL_OK")
</pallas_src>

<mosaic_0001>
module attributes {stable_mosaic.version = 11 : i64} {
  func.func @_centre_loss_kernel(%arg0: i32, %arg1: memref<16x1xi32, #tpu.memory_space<vmem>>, %arg2: memref<16x128xf32, #tpu.memory_space<vmem>>, %arg3: memref<32x128xf32, #tpu.memory_space<vmem>>, %arg4: memref<16x1xf32, #tpu.memory_space<vmem>>) attributes {dimension_semantics = [#tpu.dimension_semantics<parallel>], iteration_bounds = array<i64: 4>, scalar_prefetch = 0 : i64, scratch_operands = 0 : i64, tpu.core_type = #tpu.core_type<tc>, window_params = [{transform_indices = @transform_0, window_bounds = array<i64: 16, 1>}, {transform_indices = @transform_1, window_bounds = array<i64: 16, 128>}, {pipeline_mode = #tpu.pipeline_mode<synchronous>, transform_indices = @transform_2, window_bounds = array<i64: 32, 128>}, {transform_indices = @transform_3, window_bounds = array<i64: 16, 1>}]} {
    %c0 = arith.constant 0 : index
    %c0_0 = arith.constant 0 : index
    %0 = vector.load %arg1[%c0, %c0_0] : memref<16x1xi32, #tpu.memory_space<vmem>>, vector<16x1xi32>
    %1 = tpu.iota {dimensions = array<i32: 1>} : vector<16x32xi32>
    %c0_1 = arith.constant 0 : index
    %c0_2 = arith.constant 0 : index
    %2 = vector.load %arg3[%c0_1, %c0_2] : memref<32x128xf32, #tpu.memory_space<vmem>>, vector<32x128xf32>
    %3 = vector.broadcast %0 : vector<16x1xi32> to vector<16x32xi32>
    %4 = arith.cmpi eq, %3, %1 : vector<16x32xi32>
    %5 = arith.extui %4 : vector<16x32xi1> to vector<16x32xi32>
    %6 = arith.sitofp %5 : vector<16x32xi32> to vector<16x32xf32>
    %cst = arith.constant dense<0.000000e+00> : vector<16x128xf32>
    %7 = tpu.matmul %6, %2, %cst {dimension_numbers = #tpu.dot_dimension_numbers<[1], [0], [0], [1], [0, 0, 1, 1], [], []>} : vector<16x32xf32>, vector<32x128xf32>, vector<16x128xf32> -> vector<16x128xf32>
    %c0_3 = arith.constant 0 : index
    %c0_4 = arith.constant 0 : index
    %8 = vector.load %arg2[%c0_3, %c0_4] : memref<16x128xf32, #tpu.memory_space<vmem>>, vector<16x128xf32>
    %9 = arith.subf %8, %7 : vector<16x128xf32>
    %10 = arith.mulf %9, %9 : vector<16x128xf32>
    %cst_5 = arith.constant dense<0.000000e+00> : vector<16xf32>
    %11 = vector.multi_reduction <add>, %10, %cst_5 [1] : vector<16x128xf32> to vector<16xf32>
    %12 = vector.shape_cast %11 : vector<16xf32> to vector<16x1xf32>
    %cst_6 = arith.constant 9.99999996E-13 : f32
    %cst_7 = arith.constant 9.99999995E+11 : f32
    %13 = vector.broadcast %cst_6 : f32 to vector<16x1xf32>
    %14 = arith.maximumf %13, %12 : vector<16x1xf32>
    %15 = vector.broadcast %cst_7 : f32 to vector<16x1xf32>
    %16 = arith.minimumf %15, %14 : vector<16x1xf32>
    %c0_8 = arith.constant 0 : index
    %c0_9 = arith.constant 0 : index
    %17 = vector.load %arg4[%c0_8, %c0_9] : memref<16x1xf32, #tpu.memory_space<vmem>>, vector<16x1xf32>
    tpu.vector_store %arg4[%c0_8, %c0_9], %16 {strides = array<i32>} : memref<16x1xf32, #tpu.memory_space<vmem>>, vector<16x1xf32>,
    return
  }
  func.func @transform_0(%arg0: i32) -> (i32, i32) {
    %c0_i32 = arith.constant 0 : i32
    %c0_i32_0 = arith.constant 0 : i32
    return %arg0, %c0_i32 : i32, i32
  }
  func.func @transform_1(%arg0: i32) -> (i32, i32) {
    %c0_i32 = arith.constant 0 : i32
    %c0_i32_0 = arith.constant 0 : i32
    return %arg0, %c0_i32 : i32, i32
  }
  func.func @transform_2(%arg0: i32) -> (i32, i32) {
    %c0_i32 = arith.constant 0 : i32
    %c0_i32_0 = arith.constant 0 : i32
    %c0_i32_1 = arith.constant 0 : i32
    return %c0_i32, %c0_i32_0 : i32, i32
  }
  func.func @transform_3(%arg0: i32) -> (i32, i32) {
    %c0_i32 = arith.constant 0 : i32
    %c0_i32_0 = arith.constant 0 : i32
    return %arg0, %c0_i32 : i32, i32
  }
}

</mosaic_0001>

<bundles_post_ra>
// kernel: tpu_custom_call.1
= control target key start
LH: loop header
LB: loop body
LE: loop exit
PB: predicated region body
PF: predicated region fallthrough
CT: control target
= control target key end

     0   :  { %8 = vsyncpa [#allocation3], 0  ;;  %s543_s12 = smov 0   ;;  %s610_s0 = inlined_call_operand.vmem [shape: s32[64,1], index: 0, kind: input, shape index: {}]   ;;  %s611_s1 = inlined_call_operand.vmem [shape: f32[64,128], index: 1, kind: input, shape index: {}]   ;;  %s612_s2 = inlined_call_operand.hbm [shape: f32[32,128], index: 2, kind: input, shape index: {}]   ;;  %s613_s3 = inlined_call_operand.vmem [shape: f32[64,1], index: 3, kind: output, shape index: {}]  }
   0x1 LB: > { %s410_s13 = sadd.s32 4294967295, %s516_s12   ;;  %p412_p0 = scmp.ge.s32.totalorder %s516_s12, 1  ;;  %s516_s12 = sphi %s543_s12, %s14_s12  }
   0x2   : > { %p118_p1 = scmp.lt.s32.totalorder %s516_s12, 5  ;;  %s518_s14 = smov [#allocation2]  }
   0x3   : > { %s130_s15 = sshll.u32 %s518_s14, 4  ;;  %p557_p3 = scmp.eq.s32.totalorder %s410_s13, 0  ;;  %s131_s15 = int_to_ptr.vmem [resolvable:$true] %s130_s15 }
   0x4   : > { %p551_p2 = pnand %p412_p0, %p118_p1  ;;  %s478_s21 = scalar_lea.hbm %s612_s2, 512 }
   0x5   : > { %s618_s17 = scalar_select %p557_p3, 1, 0 }
   0x6   : > { %s617_s16 = scalar_select %p551_p2, 1, 0 }
   0x7   : > { %p458_p4 = pneg %p551_p2  ;;  %p479_p6 = scmp.ne.s32.totalorder %s612_s2, %s478_s21 }
   0x8   : > { %p485_p10 = scmp.lt.u32.totalorder %s478_s21, %s612_s2 }
   0x9   : > { %p565_p5 = pnand %p557_p3, %p458_p4 }
   0xb   : > { %p480_p7 = pneg %p565_p5 }
   0xd   : > { %p481_p8 = pnand %p480_p7, %p479_p6 }
   0xf   : > { %p482_p9 = pneg %p481_p8 }
  0x11   : > { %p487_p11 = pnand %p485_p10, %p482_p9 }
  0x13   : > { %490 = shalt.err (!%p487_p11)
}
  0x14   : > { %s491_s26 = scalar_lea.vmem %s131_s15, 512  ;;  %p499_p1 = scmp.lt.s32.totalorder %s131_s15, %s131_s15 }
  0x15   : > { %p492_p12 = scmp.ne.s32.totalorder %s131_s15, %s491_s26  ;;  %p500_p4 = scmp.lt.s32.totalorder %s491_s26, %s491_s26 }
  0x17   : > { %p494_p13 = pnand %p492_p12, %p480_p7  ;;  %p501_p3 = por %p500_p4, %p499_p1 }
  0x19   : > { %p495_p0 = pneg %p494_p13 }
  0x1b   : > { %p502_p2 = pnand %p501_p3, %p495_p0 }
  0x1d   : > { %505 = shalt.err (!%p502_p2)
}
  0x1e   : > { %s519_s27 = smov 128   ;;  %s520_s28 = smov 8  }
  0x1f   : > { %461 = dma.hbm_to_vmem [thread:$0]  (!%p565_p5), %s612_s2, 512, %s131_s15, [#allocation3], %s519_s27, %s519_s27, %s520_s28  }
  0x20   : > { %p620_p6 = scmp.ne.s32.totalorder %s617_s16, 0 }
  0x21   : > { %p621_p8 = scmp.ne.s32.totalorder (!%p620_p6), %s618_s17, 0 }
  0x22   : > { %164 = sbr.rel (%p620_p6) target bundleno = 551 (0x227), region = 32 }
  0x29   : > { %511 = dma.done.wait (%p621_p8), [#allocation3], 512  }
  0x2a   : > { %513 = vsyncadd (%p621_p8), [#allocation3], 4294966784  ;;  %s417_s4 = sshll.u32 %s410_s13, 1  ;;  %v521_v0 = vmov 0   ;;  %v215_v2 = vld [vmem:[#allocation2] sm:$0xff]  ;;  %v216_v3 = vld [vmem:[#allocation2 + $0x8] sm:$0xff]  ;;  %v213_v9 = vlaneseq }
  0x2b   : > { %477 = vset.pattern.permute.xlu0 %v521_v0  ;;  %p194_p2 = scmp.lt.s32.totalorder %s417_s4, 7  ;;  %v217_v4 = vld [vmem:[#allocation2 + $0x10] sm:$0xff]  ;;  %v218_v5 = vld [vmem:[#allocation2 + $0x18] sm:$0xff]  ;;  %v446_v7 = vpack.c.bf16 %v216_v3, %v215_v2  ;;  %vm231_vm0 = vcmask 261120   ;;  %v522_v12 = vmov 0.0   ;;  %vm327_vm3 = vcmask 7168  }
  0x2c   : > { %v450_v8 = vpack.c.bf16 %v218_v5, %v217_v4  ;;  %v214_v10 = vand.u32 127, %v213_v9 }
  0x2d   : > { %s623_s4 = smov (!%p194_p2, %s417_s4), 7  ;;  %447 = vmatprep.subr.bf16.mxu0 %v446_v7 }
  0x2e   : > { %s593_s5 = sshll.u32 %s623_s4, 3  ;;  %449 = vmatpush3.bf16.msra.mxu0 %v446_v7 }
  0x2f   : > { %s197_s8 = scalar_lea.vmem %s610_s0, %s593_s5  ;;  %451 = vmatprep.subr.bf16.mxu0 %v450_v8  ;;  %s203_s11 = scalar_lea.vmem %s611_s1, %s593_s5 }
  0x30   : > { %v211_v1 = vld [vmem:[%s197_s8] sm:$0xff]  ;;  %v212_v6 = vld [vmem:[%s197_s8 + $0x8] sm:$0xff]  ;;  %s209_s15 = scalar_lea.vmem %s613_s3, %s593_s5 }
  0x31   : > { %220 = vperm.xlu0 %477, %v211_v1   ;;  %v314_v16 = vld [vmem:[%s203_s11 + $0x8] sm:$0xff]  ;;  %v313_v17 = vld [vmem:[%s203_s11] sm:$0xff] }
  0x32   : > { %453 = vmatpush3.bf16.msra.mxu0 %v450_v8 }
  0x35   : > { %223 = vperm.xlu0 %477, %v212_v6  }
  0xb0   : > { %v221_v11 = vpop.permute.xlu0 %220 }
  0xb1   : > { %vm225_vm1 = vcmp.eq.s32.totalorder %v221_v11, %v214_v10 }
  0xb2   : > { %v423_v13 = vsel %vm225_vm1, 1.0, %v522_v12 }
  0xb3   : > { %443 = vmatprep.mubr.msk.f32.mxu0 %vm231_vm0, %v423_v13 }
  0xb4   : > { %v224_v14 = vpop.permute.xlu0 %223 }
  0xb5   : > { %vm226_vm2 = vcmp.eq.s32.totalorder %v224_v14, %v214_v10 }
  0xb6   : > { %v424_v15 = vsel %vm226_vm2, 1.0, %v522_v12 }
  0xb7   : > { %444 = vmatmul.mubr.msk.f32.vlgmr.msra.gmra.mrb[0].mxu0 %vm231_vm0, %v424_v15 }
 0x18a   : > { %v445_v18 = vpop.f32.mrb[0].mxu0 }
 0x18b   : > { %v316_v19 = vsub.f32 %v314_v16, %v445_v18  ;;  %v304_v20 = vpop.f32.mrb[1].mxu0 }
 0x18c   : > { %v315_v21 = vsub.f32 %v313_v17, %v304_v20 }
 0x18d   : > { %v318_v23 = vmul.f32 %v316_v19, %v316_v19 }
 0x18e   : > { %v317_v22 = vmul.f32 %v315_v21, %v315_v21 }
 0x190   : > { %319 = vadd.xlane.f32.xlu1 %v317_v22 }
 0x194   : > { %321 = vadd.xlane.f32.xlu1 %v318_v23 }
 0x21d   : > { %v320_v24 = vpop.xlane.xlu1 %319 }
 0x21e   : > { %v323_v25 = vmax.f32 %v320_v24, 1e-12 }
 0x220   : > { %v325_v26 = vmin.f32 %v323_v25, 1e+12 }
 0x221   : > { %v322_v27 = vpop.xlane.xlu1 %321 }
 0x222   : > { %328 = vst.msk [vmem:[%s209_s15] sm:$0xff] %vm327_vm3, %v325_v26  ;;  %v324_v28 = vmax.f32 %v322_v27, 1e-12 }
 0x224   : > { %v326_v29 = vmin.f32 %v324_v28, 1e+12 }
 0x226   : > { %329 = vst.msk [vmem:[%s209_s15 + $0x8] sm:$0xff] %vm327_vm3, %v326_v29 }
 0x227 PF: > { %s14_s12 = sadd.s32 1, %s516_s12  }
 0x228   : > { %p11_p3 = scmp.ge.s32.totalorder %s14_s12, 6  }
 0x22a   :  { %13 = sbr.rel (!%p11_p3) target bundleno = 1 (0x1), region = 70 }
 0x231   :  { %352 = vsyncpa [#allocation3], 1 }
 0x232   :  { %354 = vsyncpa [#allocation3 + $0x1], 1 }

</bundles_post_ra>
